<compile_context>
chip_gen: v6e
topology: v6e:2x2x1
jax: 0.10.0
libtpu: 0.0.40
codegen_flags: <defaults>
</compile_context>

<pallas_src>
import jax
import jax.numpy as jnp
from jax.experimental import pallas as pl
from jax.experimental.pallas import tpu as pltpu


# ----------------------------------------------------------------------------
# Kernel A: fused feature extractor hot path
#   grid = (image_blocks, P_tiles)   — P_tiles is the reduction axis (last)
#   x_ref  : (Bt, C, Pt) input images, channels x flattened-spatial (P on lanes)
#   w_ref  : (C, D, 1)   f32  1x1-conv weight (row c = weights for channel c)
#   b_ref  : (D, 1)      f32  bias
#   out_ref: (Bt, D)     f32  pooled per-image features (lane-dense)
#   acc_ref: (Bt, D)     f32  VMEM scratch GAP accumulator (resident across Pt)
# ----------------------------------------------------------------------------
def feature_kernel(x_ref, w_ref, b_ref, out_ref, acc_ref):
    j = pl.program_id(1)
    nj = pl.num_programs(1)

    @pl.when(j == 0)
    def _init():
        acc_ref[...] = jnp.zeros_like(acc_ref)

    x = x_ref[...].astype(jnp.float32)          # in-kernel cast (no wrapper HBM pass)
    bt, c, pt = x.shape

    # Channel projection as C unrolled VPU FMAs (C is tiny; MXU would be <3% used).
    # h[b, d, p] = sum_c w[c, d] * x[b, c, p]
    h = w_ref[0][None, :, :] * x[:, 0, :][:, None, :]            # (Bt, D, Pt)
    for ci in range(1, c):
        h = h + w_ref[ci][None, :, :] * x[:, ci, :][:, None, :]
    h = jnp.maximum(h + b_ref[...][None, :, :], 0.0)             # bias + ReLU (f32)

    # Partial global-average-pool over this P tile: VPU adds + one XLU lane reduce.
    acc_ref[...] += jnp.sum(h, axis=-1)                          # (Bt, D)

    @pl.when(j == nj - 1)
    def _finalize():
        out_ref[...] = acc_ref[...] * (1.0 / (pt * nj))


def _pick_b_tile(b):
    if b <= 8:
        return b
    if b % 8 == 0:
        return 8
    return b


def _pick_p_tile(p):
    if p % 128 != 0:
        return p
    for t in (2048, 1024, 512, 256, 128):
        if t <= p and p % t == 0 and p // t >= 2:
            return t
    return p


def extract_features(x_nchw, w, b):
    """CachedFeatureExtractor.get(...) analogue (no cache) for one batch.
    Accepts native NCHW (f32), returns pooled features (B, D) f32."""
    B, C, H, W = x_nchw.shape
    D = w.shape[1]
    P = H * W
    x = x_nchw.reshape(B, C, P)                  # reshape only; no transpose / cast
    w3 = w.reshape(C, D, 1).astype(jnp.float32)  # tiny, resident across the grid
    b2 = b.reshape(D, 1).astype(jnp.float32)

    bt = _pick_b_tile(B)
    pt = _pick_p_tile(P)

    return pl.pallas_call(
        feature_kernel,
        out_shape=jax.ShapeDtypeStruct((B, D), jnp.float32),
        grid=(B // bt, P // pt),
        in_specs=[
            # TODO(synk): at production P, add pipeline_mode=pl.Buffered(3) here.
            pl.BlockSpec((bt, C, pt), lambda i, j: (i, 0, j)),
            pl.BlockSpec((C, D, 1), lambda i, j: (0, 0, 0)),
            pl.BlockSpec((D, 1), lambda i, j: (0, 0)),
        ],
        out_specs=pl.BlockSpec((bt, D), lambda i, j: (i, 0)),
        scratch_shapes=[pltpu.VMEM((bt, D), jnp.float32)],
        compiler_params=pltpu.CompilerParams(
            dimension_semantics=("parallel", "arbitrary"),
            vmem_limit_bytes=48 * 1024 * 1024,
        ),
    )(x, w3, b2)


# ----------------------------------------------------------------------------
# Kernel B: box scoring for ALL programs in one grid step
#   idx_ref    : (Pprog,) int32 SMEM  program -> concept index (scalar prefetch)
#   centers_ref: (K, D) f32  VMEM-resident box registry centers
#   offsets_ref: (K, D) f32  VMEM-resident box registry offsets (half-widths)
#   proto_ref  : (1, D) f32  train-shot prototype
#   feats_ref  : (V, D) f32  val features
#   logits_ref : (Pprog, V) f32  containment energies (0 inside, <0 outside)
#   queried_ref: (Pprog, D) f32  adapted centers (queried_embedding)
# ----------------------------------------------------------------------------
def box_kernel(idx_ref, centers_ref, offsets_ref, proto_ref, feats_ref,
               logits_ref, queried_ref):
    proto = proto_ref[...]                       # (1, D)
    feats = feats_ref[...]                       # (V, D)
    k = centers_ref.shape[0]
    n = logits_ref.shape[0]
    v = feats.shape[0]
    for i in range(n):                           # Pprog is small & static -> unrolled
        ci = jnp.clip(idx_ref[i], 0, k - 1)      # bounds-check the gather index
        center = 0.5 * centers_ref[pl.ds(ci, 1), :] + 0.5 * proto   # (1, D)
        offset = jnp.abs(offsets_ref[pl.ds(ci, 1), :])              # (1, D)
        queried_ref[pl.ds(i, 1), :] = center
        viol = jnp.maximum(jnp.abs(feats - center) - offset, 0.0)   # (V, D)
        # D-reduction on VPU/XLU (no f32 mat-vec on the MXU); lane-dense row store.
        logits_ref[pl.ds(i, 1), :] = (-jnp.sum(viol, axis=-1)).reshape(1, v)


def box_score_programs(concept_idx, box_center, box_offset, proto, val_feats):
    """Score val features against per-program adapted concept boxes.
    Returns (logits (Pprog, V), adapted_centers (Pprog, D))."""
    Pn = concept_idx.shape[0]
    K, D = box_center.shape
    V = val_feats.shape[0]

    logits, queried = pl.pallas_call(
        box_kernel,
        out_shape=(
            jax.ShapeDtypeStruct((Pn, V), jnp.float32),
            jax.ShapeDtypeStruct((Pn, D), jnp.float32),
        ),
        grid_spec=pltpu.PrefetchScalarGridSpec(
            num_scalar_prefetch=1,
            grid=(1,),
            in_specs=[
                pl.BlockSpec((K, D), lambda i, idx: (0, 0)),   # full registry resident
                pl.BlockSpec((K, D), lambda i, idx: (0, 0)),
                pl.BlockSpec((1, D), lambda i, idx: (0, 0)),
                pl.BlockSpec((V, D), lambda i, idx: (0, 0)),
            ],
            out_specs=(
                pl.BlockSpec((Pn, V), lambda i, idx: (0, 0)),
                pl.BlockSpec((Pn, D), lambda i, idx: (0, 0)),
            ),
        ),
        compiler_params=pltpu.CompilerParams(
            vmem_limit_bytes=48 * 1024 * 1024,
        ),
    )(
        concept_idx.astype(jnp.int32),
        box_center.astype(jnp.float32),
        box_offset.astype(jnp.float32),
        proto.astype(jnp.float32),
        val_feats.astype(jnp.float32),
    )
    return logits, queried


# ----------------------------------------------------------------------------
# FewshotModel.forward analogue
# ----------------------------------------------------------------------------
def fewshot_forward(params, inputs, training=False):
    # check_entries(self.concept_entries, inputs['info']['concept_entries'][0])
    K = params["box_center"].shape[0]
    entries = inputs["info"]["concept_entries"][0]
    if not isinstance(entries, jax.core.Tracer):          # jit-safe eager check
        if int(entries) != K:
            raise ValueError("concept entry mismatch")

    train_img = inputs["train_sample"]["image"]
    val_img = inputs["val_sample"]["image"]

    # forward_feature_extractor: two pallas_calls, no wrapper-side concat/cast.
    train_feats = extract_features(train_img, params["w"], params["b"])   # (Bt, D)
    val_feats = extract_features(val_img, params["w"], params["b"])       # (Bv, D)

    # TODO(synk): the upstream relation extractor is unspecified; pairwise
    # feature differences stand in for 'relations'.
    train_rels = train_feats[:, None, :] - train_feats[None, :, :]
    val_rels = val_feats[:, None, :] - val_feats[None, :, :]

    # Program evaluation against the (frozen) box registry.
    # TODO(synk): the program DSL (p.evaluate) is unspecified upstream; we model
    # each program as a concept index whose box center is adapted with the
    # train-shot prototype before scoring the val features.
    proto = jnp.mean(train_feats, axis=0, keepdims=True)                  # (1, D)
    logits, queried = box_score_programs(
        inputs["program"], params["box_center"], params["box_offset"], proto, val_feats
    )                                                                     # (Pprog, V), (Pprog, D)

    outputs = {
        "logits": logits,                       # per-program, per-val-sample
        "queried_embedding": queried,           # adapted centers
        "train_sample": {"features": train_feats, "relations": train_rels},
        "val_sample": {"features": val_feats, "relations": val_rels},
    }

    losses = {}
    if training:
        # TODO(synk): FewshotLoss is unspecified; use a sigmoid-BCE placeholder.
        labels = jnp.ones_like(outputs["logits"])
        p = jax.nn.sigmoid(outputs["logits"])
        losses["loss"] = -jnp.mean(
            labels * jnp.log(p + 1e-6) + (1.0 - labels) * jnp.log(1.0 - p + 1e-6)
        )

    return {**outputs, **losses}


if __name__ == "__main__":
    key = jax.random.PRNGKey(0)
    B_train, B_val, C, H, W = 2, 2, 4, 16, 16
    D, K, Pprog = 32, 8, 2

    k1, k2, k3, k4, k5 = jax.random.split(key, 5)
    params = {
        "w": jax.random.normal(k1, (C, D), jnp.float32) * 0.1,
        "b": jnp.zeros((D,), jnp.float32),
        # box registry: (center, offset) per concept; "frozen" == no grads here.
        "box_center": jax.random.normal(k2, (K, D), jnp.float32),
        "box_offset": jnp.abs(jax.random.normal(k3, (K, D), jnp.float32)) * 0.1,
    }

    inputs = {
        "info": {"concept_entries": jnp.full((1,), K, jnp.int32)},
        "train_sample": {"image": jax.random.normal(k4, (B_train, C, H, W), jnp.float32)},
        "val_sample": {"image": jax.random.normal(k5, (B_val, C, H, W), jnp.float32)},
        "program": jnp.array([1, 5], jnp.int32),  # concept index per program
    }

    out = fewshot_forward(params, inputs, training=True)
    jax.tree_util.tree_map(jax.block_until_ready, out)
    print("KERNEL_OK")
</pallas_src>

<mosaic_0001>
module attributes {stable_mosaic.version = 11 : i64} {
  func.func @feature_kernel(%arg0: i32, %arg1: i32, %arg2: memref<2x4x128xf32, #tpu.memory_space<vmem>>, %arg3: memref<4x32x1xf32, #tpu.memory_space<vmem>>, %arg4: memref<32x1xf32, #tpu.memory_space<vmem>>, %arg5: memref<2x32xf32, #tpu.memory_space<vmem>>, %arg6: memref<2x32xf32, #tpu.memory_space<vmem>>) attributes {dimension_semantics = [#tpu.dimension_semantics<parallel>, #tpu.dimension_semantics<arbitrary>], iteration_bounds = array<i64: 1, 2>, scalar_prefetch = 0 : i64, scratch_operands = 1 : i64, tpu.core_type = #tpu.core_type<tc>, window_params = [{transform_indices = @transform_0, window_bounds = array<i64: 2, 4, 128>}, {pipeline_mode = #tpu.pipeline_mode<synchronous>, transform_indices = @transform_1, window_bounds = array<i64: 4, 32, 1>}, {pipeline_mode = #tpu.pipeline_mode<synchronous>, transform_indices = @transform_2, window_bounds = array<i64: 32, 1>}, {transform_indices = @transform_3, window_bounds = array<i64: 2, 32>}]} {
    %c0_i32 = arith.constant 0 : i32
    %0 = arith.cmpi eq, %arg1, %c0_i32 : i32
    %1 = arith.extui %0 : i1 to i32
    %c0_i32_0 = arith.constant 0 : i32
    %2 = arith.cmpi ne, %1, %c0_i32_0 : i32
    scf.if %2 {
      %cst_20 = arith.constant 0.000000e+00 : f32
      %56 = vector.broadcast %cst_20 : f32 to vector<2x32xf32>
      %c0_21 = arith.constant 0 : index
      %c0_22 = arith.constant 0 : index
      %57 = vector.load %arg6[%c0_21, %c0_22] : memref<2x32xf32, #tpu.memory_space<vmem>>, vector<2x32xf32>
      tpu.vector_store %arg6[%c0_21, %c0_22], %56 {strides = array<i32>} : memref<2x32xf32, #tpu.memory_space<vmem>>, vector<2x32xf32>,
    } else {
    }
    %c0 = arith.constant 0 : index
    %c0_1 = arith.constant 0 : index
    %c0_2 = arith.constant 0 : index
    %3 = vector.load %arg2[%c0, %c0_1, %c0_2] : memref<2x4x128xf32, #tpu.memory_space<vmem>>, vector<2x4x128xf32>
    %c0_3 = arith.constant 0 : index
    %c0_4 = arith.constant 0 : index
    %c0_5 = arith.constant 0 : index
    %4 = vector.load %arg3[%c0_3, %c0_4, %c0_5] : memref<4x32x1xf32, #tpu.memory_space<vmem>>, vector<1x32x1xf32>
    %5 = vector.shape_cast %4 : vector<1x32x1xf32> to vector<32x1xf32>
    %6 = vector.shape_cast %5 : vector<32x1xf32> to vector<1x32x1xf32>
    %7 = vector.extract_strided_slice %3 {offsets = [0, 0, 0], sizes = [2, 1, 128], strides = [1, 1, 1]} : vector<2x4x128xf32> to vector<2x1x128xf32>
    %8 = vector.shape_cast %7 : vector<2x1x128xf32> to vector<2x128xf32>
    %9 = vector.shape_cast %8 : vector<2x128xf32> to vector<2x1x128xf32>
    %10 = vector.broadcast %6 : vector<1x32x1xf32> to vector<2x32x128xf32>
    %11 = vector.broadcast %9 : vector<2x1x128xf32> to vector<2x32x128xf32>
    %12 = arith.mulf %10, %11 : vector<2x32x128xf32>
    %c1 = arith.constant 1 : index
    %c0_6 = arith.constant 0 : index
    %c0_7 = arith.constant 0 : index
    %13 = vector.load %arg3[%c1, %c0_6, %c0_7] : memref<4x32x1xf32, #tpu.memory_space<vmem>>, vector<1x32x1xf32>
    %14 = vector.shape_cast %13 : vector<1x32x1xf32> to vector<32x1xf32>
    %15 = vector.shape_cast %14 : vector<32x1xf32> to vector<1x32x1xf32>
    %16 = vector.extract_strided_slice %3 {offsets = [0, 1, 0], sizes = [2, 1, 128], strides = [1, 1, 1]} : vector<2x4x128xf32> to vector<2x1x128xf32>
    %17 = vector.shape_cast %16 : vector<2x1x128xf32> to vector<2x128xf32>
    %18 = vector.shape_cast %17 : vector<2x128xf32> to vector<2x1x128xf32>
    %19 = vector.broadcast %15 : vector<1x32x1xf32> to vector<2x32x128xf32>
    %20 = vector.broadcast %18 : vector<2x1x128xf32> to vector<2x32x128xf32>
    %21 = arith.mulf %19, %20 : vector<2x32x128xf32>
    %22 = arith.addf %12, %21 : vector<2x32x128xf32>
    %c2 = arith.constant 2 : index
    %c0_8 = arith.constant 0 : index
    %c0_9 = arith.constant 0 : index
    %23 = vector.load %arg3[%c2, %c0_8, %c0_9] : memref<4x32x1xf32, #tpu.memory_space<vmem>>, vector<1x32x1xf32>
    %24 = vector.shape_cast %23 : vector<1x32x1xf32> to vector<32x1xf32>
    %25 = vector.shape_cast %24 : vector<32x1xf32> to vector<1x32x1xf32>
    %26 = vector.extract_strided_slice %3 {offsets = [0, 2, 0], sizes = [2, 1, 128], strides = [1, 1, 1]} : vector<2x4x128xf32> to vector<2x1x128xf32>
    %27 = vector.shape_cast %26 : vector<2x1x128xf32> to vector<2x128xf32>
    %28 = vector.shape_cast %27 : vector<2x128xf32> to vector<2x1x128xf32>
    %29 = vector.broadcast %25 : vector<1x32x1xf32> to vector<2x32x128xf32>
    %30 = vector.broadcast %28 : vector<2x1x128xf32> to vector<2x32x128xf32>
    %31 = arith.mulf %29, %30 : vector<2x32x128xf32>
    %32 = arith.addf %22, %31 : vector<2x32x128xf32>
    %c3 = arith.constant 3 : index
    %c0_10 = arith.constant 0 : index
    %c0_11 = arith.constant 0 : index
    %33 = vector.load %arg3[%c3, %c0_10, %c0_11] : memref<4x32x1xf32, #tpu.memory_space<vmem>>, vector<1x32x1xf32>
    %34 = vector.shape_cast %33 : vector<1x32x1xf32> to vector<32x1xf32>
    %35 = vector.shape_cast %34 : vector<32x1xf32> to vector<1x32x1xf32>
    %36 = vector.extract_strided_slice %3 {offsets = [0, 3, 0], sizes = [2, 1, 128], strides = [1, 1, 1]} : vector<2x4x128xf32> to vector<2x1x128xf32>
    %37 = vector.shape_cast %36 : vector<2x1x128xf32> to vector<2x128xf32>
    %38 = vector.shape_cast %37 : vector<2x128xf32> to vector<2x1x128xf32>
    %39 = vector.broadcast %35 : vector<1x32x1xf32> to vector<2x32x128xf32>
    %40 = vector.broadcast %38 : vector<2x1x128xf32> to vector<2x32x128xf32>
    %41 = arith.mulf %39, %40 : vector<2x32x128xf32>
    %42 = arith.addf %32, %41 : vector<2x32x128xf32>
    %c0_12 = arith.constant 0 : index
    %c0_13 = arith.constant 0 : index
    %43 = vector.load %arg4[%c0_12, %c0_13] : memref<32x1xf32, #tpu.memory_space<vmem>>, vector<32x1xf32>
    %44 = vector.shape_cast %43 : vector<32x1xf32> to vector<1x32x1xf32>
    %45 = vector.broadcast %44 : vector<1x32x1xf32> to vector<2x32x128xf32>
    %46 = arith.addf %42, %45 : vector<2x32x128xf32>
    %cst = arith.constant 0.000000e+00 : f32
    %47 = vector.broadcast %cst : f32 to vector<2x32x128xf32>
    %48 = arith.maximumf %46, %47 : vector<2x32x128xf32>
    %c0_14 = arith.constant 0 : index
    %c0_15 = arith.constant 0 : index
    %49 = vector.load %arg6[%c0_14, %c0_15] : memref<2x32xf32, #tpu.memory_space<vmem>>, vector<2x32xf32>
    %cst_16 = arith.constant dense<0.000000e+00> : vector<2x32xf32>
    %50 = vector.multi_reduction <add>, %48, %cst_16 [2] : vector<2x32x128xf32> to vector<2x32xf32>
    %51 = arith.addf %49, %50 : vector<2x32xf32>
    %c0_17 = arith.constant 0 : index
    %c0_18 = arith.constant 0 : index
    %52 = vector.load %arg6[%c0_17, %c0_18] : memref<2x32xf32, #tpu.memory_space<vmem>>, vector<2x32xf32>
    tpu.vector_store %arg6[%c0_17, %c0_18], %51 {strides = array<i32>} : memref<2x32xf32, #tpu.memory_space<vmem>>, vector<2x32xf32>,
    %c1_i32 = arith.constant 1 : i32
    %53 = arith.cmpi eq, %arg1, %c1_i32 : i32
    %54 = arith.extui %53 : i1 to i32
    %c0_i32_19 = arith.constant 0 : i32
    %55 = arith.cmpi ne, %54, %c0_i32_19 : i32
    scf.if %55 {
      %c0_20 = arith.constant 0 : index
      %c0_21 = arith.constant 0 : index
      %56 = vector.load %arg6[%c0_20, %c0_21] : memref<2x32xf32, #tpu.memory_space<vmem>>, vector<2x32xf32>
      %cst_22 = arith.constant 3.906250e-03 : f32
      %57 = vector.broadcast %cst_22 : f32 to vector<2x32xf32>
      %58 = arith.mulf %56, %57 : vector<2x32xf32>
      %c0_23 = arith.constant 0 : index
      %c0_24 = arith.constant 0 : index
      %59 = vector.load %arg5[%c0_23, %c0_24] : memref<2x32xf32, #tpu.memory_space<vmem>>, vector<2x32xf32>
      tpu.vector_store %arg5[%c0_23, %c0_24], %58 {strides = array<i32>} : memref<2x32xf32, #tpu.memory_space<vmem>>, vector<2x32xf32>,
    } else {
    }
    return
  }
  func.func @transform_0(%arg0: i32, %arg1: i32) -> (i32, i32, i32) {
    %c0_i32 = arith.constant 0 : i32
    %c0_i32_0 = arith.constant 0 : i32
    return %arg0, %c0_i32, %arg1 : i32, i32, i32
  }
  func.func @transform_1(%arg0: i32, %arg1: i32) -> (i32, i32, i32) {
    %c0_i32 = arith.constant 0 : i32
    %c0_i32_0 = arith.constant 0 : i32
    %c0_i32_1 = arith.constant 0 : i32
    %c0_i32_2 = arith.constant 0 : i32
    return %c0_i32, %c0_i32_0, %c0_i32_1 : i32, i32, i32
  }
  func.func @transform_2(%arg0: i32, %arg1: i32) -> (i32, i32) {
    %c0_i32 = arith.constant 0 : i32
    %c0_i32_0 = arith.constant 0 : i32
    %c0_i32_1 = arith.constant 0 : i32
    return %c0_i32, %c0_i32_0 : i32, i32
  }
  func.func @transform_3(%arg0: i32, %arg1: i32) -> (i32, i32) {
    %c0_i32 = arith.constant 0 : i32
    %c0_i32_0 = arith.constant 0 : i32
    return %arg0, %c0_i32 : i32, i32
  }
}

</mosaic_0001>

<bundles_post_ra>
// kernel: tpu_custom_call.1
= control target key start
LH: loop header
LB: loop body
LE: loop exit
PB: predicated region body
PF: predicated region fallthrough
CT: control target
= control target key end

     0   :  { %8 = vsyncpa [#allocation5], 0  ;;  %s780_s12 = smov 0   ;;  %s782_s13 = smov 0   ;;  %s970_s0 = inlined_call_operand.vmem [shape: f32[2,4,256], index: 0, kind: input, shape index: {}]   ;;  %s971_s1 = inlined_call_operand.vmem [shape: f32[4,32,1], index: 1, kind: input, shape index: {}]   ;;  %s972_s2 = inlined_call_operand.vmem [shape: f32[32,1], index: 2, kind: input, shape index: {}]   ;;  %s973_s3 = inlined_call_operand.hbm [shape: f32[2,32], index: 3, kind: output, shape index: {}]  }
   0x1   :  { %s784_s14 = smov 0   ;;  %s786_s15 = smov 0  }
   0x2   :  { %s788_s16 = smov 0  }
   0x3 LB: > { %s613_s17 = sadd.s32 4294967295, %s755_s16   ;;  %s23_s18 = sadd.s32 1, %s751_s15  ;;  %s755_s16 = sphi %s788_s16, %s14_s16   ;;  %s751_s15 = sphi %s786_s15, %s978_s15   ;;  %s747_s14 = sphi %s784_s14, %s977_s14   ;;  %s743_s13 = sphi %s782_s13, %s976_s13   ;;  %s739_s12 = sphi %s780_s12, %s975_s12  }
   0x4   : > { %p24_p0 = scmp.ge.s32.totalorder %s23_s18, 2  ;;  %p42_p1 = scmp.ne.s32.totalorder %s743_s13, %s739_s12 }
   0x5   : > { %p43_p2 = scmp.eq.s32.totalorder %s755_s16, 0  ;;  %s35_s20 = sadd.s32 1, %s743_s13 }
   0x6   : > { %s980_s18 = smov (%p24_p0, %s23_s18), 0  ;;  %p615_p5 = scmp.ge.s32.totalorder %s755_s16, 2 }
   0x7   : > { %p44_p3 = por %p43_p2, %p42_p1  ;;  %s31_s19 = ssub.s32 %s751_s15, %s980_s18 }
   0x8   : > { %p33_p4 = scmp.eq.s32.totalorder %s31_s19, 0  ;;  %142 = sbr.rel (%p615_p5) target bundleno = 18 (0x12), region = 24 }
   0xa   : > { %s816_s21 = scalar_select %p33_p4, %s743_s13, %s35_s20  }
   0xd   : > { %145 = sbr.rel (!%p44_p3) target bundleno = 18 (0x12), region = 28  ;;  %s147_s22 = sand.u32 (%p44_p3), 1, %s743_s13  }
   0xe   : > { %s617_s23 = sshll.u32 (%p44_p3), %s751_s15, 2  ;;  %s616_s24 = sshll.u32 (%p44_p3), %s147_s22, 3 }
   0xf   : > { %s154_s27 = scalar_lea.vmem (%p44_p3), %s970_s0, %s617_s23  ;;  %s149_s28 = scalar_lea.vmem (%p44_p3), [#allocation3], %s616_s24 }
  0x10   : > { %v171_v0 = vld [vmem:[%s154_s27] sm:$0xf] (%p44_p3)  ;;  %v173_v1 = vld [vmem:[%s154_s27 + $0x8] sm:$0xf] (%p44_p3) }
  0x11   : > { %172 = vst [vmem:[%s149_s28] sm:$0xf] (%p44_p3), %v171_v0  ;;  %174 = vst [vmem:[%s149_s28 + $0x4] sm:$0xf] (%p44_p3), %v173_v1 }
  0x12 PF: > { %p618_p6 = scmp.ge.s32.totalorder %s755_s16, 1  ;;  %p201_p7 = scmp.lt.s32.totalorder %s755_s16, 3 }
  0x14   : > { %p202_p8 = pnand %p618_p6, %p201_p7 }
  0x15   : > { %s208_s29 = sand.u32 (!%p202_p8), 1, %s739_s12   ;;  %p620_p9 = scmp.ne.s32.totalorder (!%p202_p8), %s747_s14, 0 }
  0x16   : > { %205 = sbr.rel (%p202_p8) target bundleno = 382 (0x17e), region = 69  ;;  %s827_s30 = sshll.u32 (!%p202_p8), %s208_s29, 3 }
  0x17   : > { %s210_s4 = scalar_lea.vmem (!%p202_p8), [#allocation3], %s827_s30 }
  0x1b   : > { %230 = sbr.rel (%p620_p9) target bundleno = 34 (0x22), region = 77 }
  0x20   : > { %vm231_vm0 = vcmask 254976   ;;  %v757_v2 = vmov 0.0  }
  0x21   : > { %232 = vst.msk [vmem:[#allocation2] sm:$0x3] %vm231_vm0, %v757_v2 }
  0x22 PF: > { %v621_v3 = vld [vmem:[%s971_s1 + $0x20] sm:$0xff]  ;;  %v758_v5 = vmov 0   ;;  %v622_v6 = vld [vmem:[%s971_s1 + $0x28] sm:$0xff]  ;;  %v623_v8 = vld [vmem:[%s971_s1 + $0x30] sm:$0xff]  ;;  %v259_v28 = vlaneseq  ;;  %vm498_vm1 = vcmask 130112   ;;  %vm505_vm2 = vcmask 195712  }
  0x23   : > { %v235_v4 = vld [vmem:[%s971_s1] sm:$0xff]  ;;  %688 = vset.pattern.permute.xlu1 %v758_v5  ;;  %687 = vset.pattern.permute.xlu0 %v758_v5  ;;  %v236_v7 = vld [vmem:[%s971_s1 + $0x8] sm:$0xff]  ;;  %v237_v9 = vld [vmem:[%s971_s1 + $0x10] sm:$0xff]  ;;  %vm512_vm3 = vcmask 261312   ;;  %vm533_vm4 = vcmask 1041409   ;;  %vm537_vm5 = vcmask 254976  }
  0x24   : > { %282 = vperm.xlu1 %688, %v621_v3   ;;  %241 = vperm.xlu0 %687, %v235_v4   ;;  %v624_v10 = vld [vmem:[%s971_s1 + $0x38] sm:$0xff]  ;;  %v626_v12 = vld [vmem:[%s971_s1 + $0x48] sm:$0xff]  ;;  %v625_v13 = vld [vmem:[%s971_s1 + $0x40] sm:$0xff]  ;;  %v892_v31 = vshrl.u32 %v259_v28, 7  ;;  %p633_p10 = scmp.ne.s32.totalorder %s747_s14, 1 }
  0x25   : > { %v238_v11 = vld [vmem:[%s971_s1 + $0x18] sm:$0xff]  ;;  %v627_v15 = vld [vmem:[%s971_s1 + $0x50] sm:$0xff]  ;;  %v630_v16 = vld [vmem:[%s971_s1 + $0x68] sm:$0xff] }
  0x26   : > { %v628_v14 = vld [vmem:[%s971_s1 + $0x58] sm:$0xff]  ;;  %v629_v17 = vld [vmem:[%s971_s1 + $0x60] sm:$0xff]  ;;  %v631_v19 = vld [vmem:[%s971_s1 + $0x70] sm:$0xff]  ;;  %v302_v34 = vsub.s32 1, %v892_v31  ;;  %v261_v35 = vsub.s32 0, %v892_v31  ;;  %v351_v40 = vsub.s32 2, %v892_v31 }
  0x27   : > { %v632_v18 = vld [vmem:[%s971_s1 + $0x78] sm:$0xff]  ;;  %v423_v20 = vld [vmem:[%s972_s2 + $0x8] sm:$0xff]  ;;  %v422_v21 = vld [vmem:[%s972_s2] sm:$0xff]  ;;  %v400_v41 = vsub.s32 3, %v892_v31 }
  0x28   : > { %287 = vperm.xlu1 %688, %v622_v6   ;;  %246 = vperm.xlu0 %687, %v236_v7   ;;  %v425_v22 = vld [vmem:[%s972_s2 + $0x18] sm:$0xff]  ;;  %v424_v23 = vld [vmem:[%s972_s2 + $0x10] sm:$0xff]  ;;  %v233_v36 = vld [vmem:[%s210_s4] sm:$0xf] }
  0x29   : > { %v234_v39 = vld [vmem:[%s210_s4 + $0x4] sm:$0xf]  ;;  %v303_v42 = vrot.slane %v233_v36, %v302_v34  ;;  %v262_v43 = vrot.slane %v233_v36, %v261_v35  ;;  %v352_v48 = vrot.slane %v233_v36, %v351_v40  ;;  %v401_v49 = vrot.slane %v233_v36, %v400_v41 }
  0x2a   : > { %v906_v44 = vrot.slane %v234_v39, %v302_v34  ;;  %v908_v45 = vrot.slane %v234_v39, %v261_v35  ;;  %v914_v56 = vrot.slane %v234_v39, %v351_v40  ;;  %v405_v63 = vrot.slane %v234_v39, %v400_v41 }
  0x2c   : > { %292 = vperm.xlu1 %688, %v623_v8   ;;  %251 = vperm.xlu0 %687, %v237_v9  }
  0x30   : > { %297 = vperm.xlu1 %688, %v624_v10   ;;  %256 = vperm.xlu0 %687, %v238_v11  }
  0x34   : > { %336 = vperm.xlu1 %688, %v626_v12   ;;  %331 = vperm.xlu0 %687, %v625_v13  }
  0x38   : > { %346 = vperm.xlu1 %688, %v628_v14   ;;  %341 = vperm.xlu0 %687, %v627_v15  }
  0x3c   : > { %385 = vperm.xlu1 %688, %v630_v16   ;;  %380 = vperm.xlu0 %687, %v629_v17  }
  0x40   : > { %395 = vperm.xlu1 %688, %v632_v18   ;;  %390 = vperm.xlu0 %687, %v631_v19  }
  0x44   : > { %433 = vperm.xlu1 %688, %v423_v20   ;;  %428 = vperm.xlu0 %687, %v422_v21  }
  0x48   : > { %443 = vperm.xlu1 %688, %v425_v22   ;;  %438 = vperm.xlu0 %687, %v424_v23  }
  0x9f   : > { %v283_v24 = vpop.permute.xlu1 %282  ;;  %v242_v25 = vpop.permute.xlu0 %241 }
  0xa0   : > { %v308_v50 = vmul.f32 %v303_v42, %v283_v24  ;;  %v267_v51 = vmul.f32 %v262_v43, %v242_v25  ;;  %v312_v54 = vmul.f32 %v906_v44, %v283_v24  ;;  %v271_v55 = vmul.f32 %v908_v45, %v242_v25 }
  0xa2   : > { %v316_v0 = vadd.f32 %v308_v50, %v267_v51  ;;  %v320_v4 = vadd.f32 %v312_v54, %v271_v55 }
  0xa3   : > { %v288_v26 = vpop.permute.xlu1 %287  ;;  %v247_v27 = vpop.permute.xlu0 %246 }
  0xa4   : > { %v309_v52 = vmul.f32 %v303_v42, %v288_v26  ;;  %v268_v53 = vmul.f32 %v262_v43, %v247_v27  ;;  %v313_v10 = vmul.f32 %v906_v44, %v288_v26  ;;  %v272_v14 = vmul.f32 %v908_v45, %v247_v27 }
  0xa6   : > { %v317_v1 = vadd.f32 %v309_v52, %v268_v53 }
  0xa7   : > { %v293_v29 = vpop.permute.xlu1 %292  ;;  %v252_v30 = vpop.permute.xlu0 %251 }
  0xa8   : > { %v310_v61 = vmul.f32 %v303_v42, %v293_v29  ;;  %v269_v62 = vmul.f32 %v262_v43, %v252_v30  ;;  %v314_v15 = vmul.f32 %v906_v44, %v293_v29  ;;  %v273_v22 = vmul.f32 %v908_v45, %v252_v30 }
  0xa9   : > { %v321_v29 = vadd.f32 %v313_v10, %v272_v14  ;;  %v488_v10 = vand.u32 127, %v259_v28 }
  0xaa   : > { %v318_v16 = vadd.f32 %v310_v61, %v269_v62  ;;  %v322_v53 = vadd.f32 %v314_v15, %v273_v22 }
  0xab   : > { %v894_v32 = vpop.permute.xlu1 %297  ;;  %v896_v33 = vpop.permute.xlu0 %256 }
  0xac   : > { %v311_v5 = vmul.f32 %v303_v42, %v894_v32  ;;  %v270_v6 = vmul.f32 %v262_v43, %v896_v33 }
  0xae   : > { %v319_v23 = vadd.f32 %v311_v5, %v270_v6 }
  0xaf   : > { %v337_v37 = vpop.permute.xlu1 %336  ;;  %v332_v38 = vpop.permute.xlu0 %331 }
  0xb0   : > { %v358_v59 = vmul.f32 %v352_v48, %v337_v37  ;;  %v357_v60 = vmul.f32 %v352_v48, %v332_v38  ;;  %v361_v7 = vmul.f32 %v914_v56, %v332_v38  ;;  %v362_v24 = vmul.f32 %v914_v56, %v337_v37 }
  0xb2   : > { %v366_v11 = vadd.f32 %v358_v59, %v317_v1  ;;  %v365_v12 = vadd.f32 %v357_v60, %v316_v0  ;;  %v369_v25 = vadd.f32 %v361_v7, %v320_v4  ;;  %v370_v50 = vadd.f32 %v362_v24, %v321_v29 }
  0xb3   : > { %v910_v46 = vpop.permute.xlu1 %346  ;;  %v342_v47 = vpop.permute.xlu0 %341 }
  0xb4   : > { %v359_v13 = vmul.f32 %v352_v48, %v342_v47  ;;  %v360_v18 = vmul.f32 %v352_v48, %v910_v46  ;;  %v363_v30 = vmul.f32 %v914_v56, %v342_v47  ;;  %v364_v47 = vmul.f32 %v914_v56, %v910_v46 }
  0xb6   : > { %v367_v35 = vadd.f32 %v359_v13, %v318_v16  ;;  %v368_v41 = vadd.f32 %v360_v18, %v319_v23  ;;  %v371_v62 = vadd.f32 %v363_v30, %v322_v53  ;;  %v507_v13 = vadd.s32 4294967272, %v488_v10 }
  0xb7   : > { %v386_v57 = vpop.permute.xlu1 %385  ;;  %v381_v58 = vpop.permute.xlu0 %380  ;;  %v491_v16 = vsub.s32 %v488_v10, %v892_v31 }
  0xb8   : > { %v407_v2 = vmul.f32 %v401_v49, %v386_v57  ;;  %v406_v3 = vmul.f32 %v401_v49, %v381_v58  ;;  %v410_v17 = vmul.f32 %v405_v63, %v381_v58  ;;  %v411_v39 = vmul.f32 %v405_v63, %v386_v57 }
  0xb9   : > { %v274_v57 = vmul.f32 %v908_v45, %v896_v33  ;;  %v510_v18 = vsub.s32 %v507_v13, %v892_v31 }
  0xba   : > { %v415_v20 = vadd.f32 %v407_v2, %v366_v11  ;;  %v414_v21 = vadd.f32 %v406_v3, %v365_v12  ;;  %v418_v40 = vadd.f32 %v410_v17, %v369_v25  ;;  %v419_v59 = vadd.f32 %v411_v39, %v370_v50 }
  0xbb   : > { %v396_v8 = vpop.permute.xlu1 %395  ;;  %v391_v9 = vpop.permute.xlu0 %390 }
  0xbc   : > { %v408_v19 = vmul.f32 %v401_v49, %v391_v9  ;;  %v409_v36 = vmul.f32 %v401_v49, %v396_v8  ;;  %v315_v49 = vmul.f32 %v906_v44, %v894_v32  ;;  %v412_v58 = vmul.f32 %v405_v63, %v391_v9 }
  0xbd   : > { %v413_v3 = vmul.f32 %v405_v63, %v396_v8  ;;  %v493_v63 = vadd.s32 4294967288, %v488_v10  ;;  %v500_v8 = vadd.s32 4294967280, %v488_v10 }
  0xbe   : > { %v416_v42 = vadd.f32 %v408_v19, %v367_v35  ;;  %v417_v54 = vadd.f32 %v409_v36, %v368_v41  ;;  %v323_v2 = vadd.f32 %v315_v49, %v274_v57  ;;  %v420_v4 = vadd.f32 %v412_v58, %v371_v62 }
  0xbf   : > { %v434_v26 = vpop.permute.xlu1 %433  ;;  %v429_v34 = vpop.permute.xlu0 %428  ;;  %v496_v15 = vsub.s32 %v493_v63, %v892_v31  ;;  %v503_v17 = vsub.s32 %v500_v8, %v892_v31  ;;  %v462_v31 = vld [vmem:[#allocation2] sm:$0x3] }
  0xc0   : > { %v447_v27 = vadd.f32 %v434_v26, %v415_v20  ;;  %v446_v38 = vadd.f32 %v429_v34, %v414_v21  ;;  %v450_v51 = vadd.f32 %v429_v34, %v418_v40  ;;  %v451_v0 = vadd.f32 %v434_v26, %v419_v59 }
  0xc1   : > { %v372_v44 = vadd.f32 %v364_v47, %v323_v2 }
  0xc2   : > { %v455_v43 = vmax.f32 %v447_v27, 0.0  ;;  %v454_v48 = vmax.f32 %v446_v38, 0.0  ;;  %v458_v1 = vmax.f32 %v450_v51, 0.0  ;;  %v459_v33 = vmax.f32 %v451_v0, 0.0 }
  0xc3   : > { %v444_v52 = vpop.permute.xlu1 %443  ;;  %v439_v37 = vpop.permute.xlu0 %438  ;;  %v421_v45 = vadd.f32 %v413_v3, %v372_v44 }
  0xc4   : > { %v448_v55 = vadd.f32 %v439_v37, %v416_v42  ;;  %465 = vadd.xlane.f32.xlu1 %v455_v43  ;;  %463 = vadd.xlane.f32.xlu0 %v454_v48  ;;  %v449_v60 = vadd.f32 %v444_v52, %v417_v54  ;;  %v452_v5 = vadd.f32 %v439_v37, %v420_v4 }
  0xc5   : > { %v453_v6 = vadd.f32 %v444_v52, %v421_v45 }
  0xc6   : > { %v456_v61 = vmax.f32 %v448_v55, 0.0  ;;  %v457_v32 = vmax.f32 %v449_v60, 0.0  ;;  %v460_v7 = vmax.f32 %v452_v5, 0.0 }
  0xc7   : > { %v461_v9 = vmax.f32 %v453_v6, 0.0 }
  0xc8   : > { %467 = vadd.xlane.f32.xlu1 %v456_v61  ;;  %471 = vadd.xlane.f32.xlu0 %v458_v1 }
  0xcc   : > { %469 = vadd.xlane.f32.xlu1 %v457_v32  ;;  %473 = vadd.xlane.f32.xlu0 %v459_v33 }
  0xd0   : > { %475 = vadd.xlane.f32.xlu0 %v460_v7 }
  0xd4   : > { %477 = vadd.xlane.f32.xlu0 %v461_v9 }
 0x14d   : > { %v466_v46 = vpop.xlane.xlu1 %465  ;;  %v464_v56 = vpop.xlane.xlu0 %463 }
 0x14e   : > { %v497_v21 = vrot.slane %v466_v46, %v496_v15  ;;  %v492_v22 = vrot.slane %v464_v56, %v491_v16 }
 0x150   : > { %v499_v35 = vsel %vm498_vm1, %v497_v21, %v492_v22 }
 0x151   : > { %v472_v11 = vpop.xlane.xlu0 %471  ;;  %v468_v12 = vpop.xlane.xlu1 %467 }
 0x152   : > { %v504_v28 = vrot.slane %v468_v12, %v503_v17  ;;  %v517_v25 = vrot.slane %v472_v11, %v491_v16 }
 0x154   : > { %v506_v38 = vsel %vm505_vm2, %v504_v28, %v499_v35 }
 0x155   : > { %v474_v14 = vpop.xlane.xlu0 %473  ;;  %v470_v19 = vpop.xlane.xlu1 %469 }
 0x156   : > { %v521_v23 = vrot.slane %v474_v14, %v496_v15  ;;  %v511_v26 = vrot.slane %v470_v19, %v510_v18 }
 0x158   : > { %v522_v36 = vsel %vm498_vm1, %v521_v23, %v517_v25  ;;  %v513_v39 = vsel %vm512_vm3, %v511_v26, %v506_v38 }
 0x159   : > { %v476_v20 = vpop.xlane.xlu0 %475 }
 0x15a   : > { %v526_v24 = vrot.slane %v476_v20, %v503_v17 }
 0x15c   : > { %v527_v29 = vsel %vm505_vm2, %v526_v24, %v522_v36 }
 0x15d   : > { %v478_v34 = vpop.xlane.xlu0 %477 }
 0x15e   : > { %v531_v27 = vrot.slane %v478_v34, %v510_v18 }
 0x160   : > { %v532_v40 = vsel %vm512_vm3, %v531_v27, %v527_v29  ;;  %542 = sbr.rel (%p633_p10) target bundleno = 367 (0x16f), region = 81 }
 0x161   : > { %v534_v41 = vsel %vm533_vm4, %v532_v40, %v513_v39 }
 0x162   : > { %v536_v42 = vadd.f32 %v534_v41, %v462_v31 }
 0x164   : > { %538 = vst.msk [vmem:[#allocation2] sm:$0x3] %vm537_vm5, %v536_v42 }
 0x16b   : > { %v543_v43 = vld [vmem:[#allocation2] sm:$0x3] }
 0x16c   : > { %v544_v48 = vmul.f32 0.00390625, %v543_v43 }
 0x16e   : > { %545 = vst.msk [vmem:[#allocation4] sm:$0x3] %vm537_vm5, %v544_v48 }
 0x16f PF: > { %p940_p11 = scmp.eq.s32.totalorder %s613_s17, 1  ;;  %s759_s4 = smov [#allocation4]  }
 0x170   : > { %s555_s9 = sshll.u32 %s759_s4, 4  ;;  %s556_s9 = int_to_ptr.vmem [resolvable:$true] %s555_s9 }
 0x171   : > { %s689_s10 = scalar_lea.vmem %s556_s9, 32  ;;  %p696_p1 = scmp.lt.s32.totalorder %s556_s9, %s556_s9 }
 0x172   : > { %p690_p12 = scmp.ne.s32.totalorder %s556_s9, %s689_s10  ;;  %p697_p2 = scmp.lt.s32.totalorder %s689_s10, %s689_s10 }
 0x174   : > { %p691_p13 = pnand %p690_p12, %p940_p11  ;;  %p698_p3 = por %p697_p2, %p696_p1 }
 0x176   : > { %p692_p0 = pneg %p691_p13 }
 0x178   : > { %p699_p4 = pnand %p698_p3, %p692_p0 }
 0x17a   : > { %702 = shalt.err (!%p699_p4)
}
 0x17b   : > { %639 = dma.vmem_to_hbm [thread:$0]  (%p940_p11), %s556_s9, 32, %s973_s3, [#allocation5]  }
 0x17c   : > { %734 = dma.done.wait (%p940_p11), [#allocation5], 32  }
 0x17d   : > { %736 = vsyncadd (%p940_p11), [#allocation5], 4294967264 }
 0x17e PF: > { %s14_s16 = sadd.s32 1, %s755_s16   ;;  %s975_s12 = smov %s743_s13 }
 0x17f   : > { %p11_p5 = scmp.ge.s32.totalorder %s14_s16, 4   ;;  %s976_s13 = smov %s816_s21 }
 0x180   : > { %s977_s14 = smov %s751_s15  ;;  %s978_s15 = smov %s980_s18 }
 0x181   :  { %13 = sbr.rel (!%p11_p5) target bundleno = 3 (0x3), region = 117 }
 0x186   :  { %568 = vsyncpa [#allocation5], 1 }
 0x187   :  { %570 = vsyncpa [#allocation5 + $0x1], 1 }

</bundles_post_ra>
